<compile_context>
chip_gen: v7x
topology: tpu7x:2x2x1
jax: 0.10.0
libtpu: 0.0.40
codegen_flags: <defaults>
</compile_context>

<pallas_src>
import functools

import jax
import jax.numpy as jnp
import numpy as np
from jax import lax
from jax.experimental import pallas as pl
from jax.experimental.pallas import tpu as pltpu


_LANES = 128
_SUBLANES = 8
_ROW_BASE = 32            # row-tile granularity: safe sublane packing for f32/bf16/int8
_SEL_CHUNK_ROWS = 32      # row chunk for the in-VMEM selection loops
_MAX_TILE_ELEMS = 512 * 1024   # ~2 MiB f32 per streamed tile (~85% of HBM roofline)


def _round_up(x, m):
    return -(-x // m) * m


def _vmem_capacity_bytes():
    """Physical VMEM per core; conservative 64 MiB (v7x) if the query fails."""
    try:
        cap = getattr(pltpu.get_tpu_info(), "vmem_capacity_bytes", None)
        if cap:
            return int(cap)
    except Exception:
        pass
    return 64 * 1024 * 1024


# ----------------------------------------------------------------------------
# Kernel 1: elementwise BCE + per-tile packed partial reductions
# ----------------------------------------------------------------------------
def _balance_bce_kernel(pred_ref, gt_ref, mask_ref,   # inputs  (TR, W) tiles
                        negloss_ref,                  # output  (TR, W) neg-loss tile
                        part_ref):                    # output  (1, 8, 128) partials
    # In-kernel casts: pred may be bf16, gt/mask may be int8 — cuts HBM bytes
    # and avoids the wrapper materialising f32 copies in HBM.
    pred = pred_ref[...].astype(jnp.float32)
    gt = gt_ref[...].astype(jnp.float32)
    mask = mask_ref[...].astype(jnp.float32)

    # Clamp keeps the log args valid and neg-loss >= 0 (required by the
    # bitwise top-k ordering trick) even if an unnormalised pred slips in.
    pred = jnp.clip(pred, 0.0, 1.0)

    pos = gt * mask            # positive pixels
    neg = mask - pos           # == (1 - gt) * mask

    # Exact PyTorch F.binary_cross_entropy (log terms clamped at -100); valid
    # for soft (non-binary) gt as well.  The 2 EUP logs/elem are free filler
    # in this HBM-bound kernel.
    log_p = jnp.maximum(jnp.log(pred), -100.0)
    log_1mp = jnp.maximum(jnp.log(1.0 - pred), -100.0)
    loss = -(gt * log_p + (1.0 - gt) * log_1mp)

    # Per-pixel negative-loss map (consumed by the top-k selection kernel).
    negloss_ref[...] = loss * neg

    # Per-tile partials packed into ONE lane-dense (8,128) block:
    #   sublane 0 -> sum(loss*pos), sublane 1 -> sum(pos), sublane 2 -> sum(neg).
    # Every grid step stays independent, so the grid axis is "parallel".
    row = lax.broadcasted_iota(jnp.int32, (_SUBLANES, _LANES), 0)
    part_ref[0] = jnp.where(
        row == 0, jnp.sum(loss * pos),
        jnp.where(row == 1, jnp.sum(pos), jnp.sum(neg))).astype(jnp.float32)


# ----------------------------------------------------------------------------
# Kernel 2: exact sum of the k largest negative losses (map VMEM-resident)
# ----------------------------------------------------------------------------
def _topk_neg_sum_kernel(k_ref, neg_ref, out_ref, *, n_chunks, chunk_rows):
    """Sum of the k largest entries of the non-negative map held in VMEM.

    31-step bitwise search for the exact k-th largest f32 value (monotone
    counting over int32 bit patterns) followed by one masked-sum pass plus an
    exact tie correction.  The map is read from HBM exactly once (into VMEM);
    all 31+1 passes then run at VMEM bandwidth (~8x HBM).
    """
    kk = k_ref[0]

    def chunk(c):
        off = pl.multiple_of(c * chunk_rows, chunk_rows)
        x = neg_ref[pl.ds(off, chunk_rows), :]
        # Values are >= 0, so the int32 bit pattern orders like the value;
        # max(.,0) canonicalises any -0.0.
        keys = jnp.maximum(pltpu.bitcast(x, jnp.int32), 0)
        return x, keys

    def count_ge(cand):
        def body(c, acc):
            _, keys = chunk(c)
            return acc + jnp.sum((keys >= cand).astype(jnp.int32))
        return lax.fori_loop(0, n_chunks, body, jnp.int32(0))

    def bit_step(i, t):
        cand = t | (jnp.int32(1) << (30 - i))
        return jnp.where(count_ge(cand) >= kk, cand, t)

    # Largest key T with count(keys >= T) >= k  ==  the exact k-th largest key.
    t_key = lax.fori_loop(0, 31, bit_step, jnp.int32(0))

    def final_body(c, carry):
        cnt, s, tie = carry
        x, keys = chunk(c)
        above = keys > t_key
        cnt = cnt + jnp.sum(above.astype(jnp.int32))
        s = s + jnp.sum(jnp.where(above, x, 0.0))
        tie = jnp.maximum(tie, jnp.max(jnp.where(keys == t_key, x, 0.0)))
        return cnt, s, tie

    cnt, s, tie = lax.fori_loop(
        0, n_chunks, final_body,
        (jnp.int32(0), jnp.float32(0.0), jnp.float32(0.0)))

    # sum(topk) = sum(x > threshold) + (#remaining slots) * threshold_value.
    # (k == 0 falls out naturally: nothing above/equal -> 0.)
    neg_sum = s + (kk - cnt).astype(jnp.float32) * tie
    out_ref[...] = jnp.full((_SUBLANES, _LANES), neg_sum, dtype=jnp.float32)


# ----------------------------------------------------------------------------
# Tiling helper
# ----------------------------------------------------------------------------
def _pick_row_tiling(n_rows, n_cols, max_tile_elems):
    """Return (tile_rows, grid_steps, padded_rows)."""
    max_rows = max(_ROW_BASE,
                   (max_tile_elems // max(n_cols, 1)) // _ROW_BASE * _ROW_BASE)
    if n_rows >= 2 * _ROW_BASE:
        # Cap at ~half the rows so the grid has >= 2 "parallel" steps and both
        # v7x TensorCores get work (one extra ~0.35 us grid step elsewhere).
        upper = min(max_rows, _round_up((n_rows + 1) // 2, _ROW_BASE))
    else:
        upper = _ROW_BASE
    upper = max(upper, _ROW_BASE)

    # Prefer a divisor of n_rows (no padding copies in the wrapper).
    best = 0
    for cand in range(upper, _ROW_BASE - 1, -_ROW_BASE):
        if n_rows % cand == 0:
            best = cand
            break
    if best * 4 >= upper:            # divisor keeps tiles within 4x of target
        return best, n_rows // best, n_rows

    # Awkward row count: pad up to a multiple of the target tile instead of
    # silently regressing to tiny tiles (tiny tiles measure ~3x slower).
    padded = _round_up(n_rows, upper)
    return upper, padded // upper, padded


# ----------------------------------------------------------------------------
# Wrapper: BalanceCrossEntropyLoss
# ----------------------------------------------------------------------------
@functools.partial(
    jax.jit,
    static_argnames=("negative_ratio", "eps", "max_tile_elems", "topk_in_pallas"))
def balance_cross_entropy_loss(pred, gt, mask, *, negative_ratio=3.0, eps=1e-6,
                               max_tile_elems=_MAX_TILE_ELEMS,
                               topk_in_pallas=None):
    """BalanceCrossEntropyLoss(pred, gt, mask); all inputs are (N, 1, H, W).

    pred may be f32/bf16, gt/mask may be f32/bf16/int8 (cast in-kernel)."""
    N, C, H, W = pred.shape
    assert C == 1
    R = N * C * H

    # Lane-dense (rows, W) slabs; dtypes preserved (casts happen in-kernel).
    pred2 = pred.reshape(R, W)
    gt2 = gt.reshape(R, W)
    mask2 = mask.reshape(R, W)

    TR, G, R_pad = _pick_row_tiling(R, W, max_tile_elems)
    if R_pad != R:
        # Rare, awkward shapes only.  Pad with mask=0 so extra rows contribute
        # nothing (pred padded to 0.5 keeps the log finite).
        # TODO(synk): an in-kernel masked last tile would avoid this copy.
        pad = ((0, R_pad - R), (0, 0))
        pred2 = jnp.pad(pred2, pad, constant_values=0.5)
        gt2 = jnp.pad(gt2, pad)
        mask2 = jnp.pad(mask2, pad)

    # Per-generation scoped-VMEM budget (v5e/v6e: 128 MiB physical, v7x: 64 MiB).
    vmem_limit = min(int(0.75 * _vmem_capacity_bytes()), 96 * 2**20)

    tile_spec = pl.BlockSpec((TR, W), lambda i: (i, 0))
    neg_loss_map, partials = pl.pallas_call(
        _balance_bce_kernel,
        out_shape=(
            jax.ShapeDtypeStruct((R_pad, W), jnp.float32),          # neg-loss map
            jax.ShapeDtypeStruct((G, _SUBLANES, _LANES), jnp.float32),  # partials
        ),
        grid=(G,),
        in_specs=[tile_spec, tile_spec, tile_spec],
        out_specs=(pl.BlockSpec((TR, W), lambda i: (i, 0)),
                   pl.BlockSpec((1, _SUBLANES, _LANES), lambda i: (i, 0, 0))),
        compiler_params=pltpu.CompilerParams(
            dimension_semantics=("parallel",),
            vmem_limit_bytes=vmem_limit),
    )(pred2, gt2, mask2)

    pos_loss_sum = jnp.sum(partials[:, 0, 0])
    # PyTorch uses int() truncation of the float sums; floor matches for the
    # non-negative counts (and for fractional masks too).
    positive_count = jnp.floor(jnp.sum(partials[:, 1, 0])).astype(jnp.int32)
    negative_total = jnp.floor(jnp.sum(partials[:, 2, 0])).astype(jnp.int32)
    negative_count = jnp.minimum(
        negative_total,
        jnp.floor(positive_count.astype(jnp.float32) * negative_ratio)
        .astype(jnp.int32))
    negative_count = jnp.maximum(negative_count, 0)

    map_bytes = R_pad * W * 4
    fits_vmem = map_bytes + (8 << 20) <= vmem_limit
    use_pallas_topk = fits_vmem if topk_in_pallas is None else topk_in_pallas

    if use_pallas_topk:
        # Single HBM read of the map; all selection passes run in VMEM.
        k_arr = jnp.reshape(negative_count, (1,)).astype(jnp.int32)
        sel = pl.pallas_call(
            functools.partial(_topk_neg_sum_kernel,
                              n_chunks=R_pad // _SEL_CHUNK_ROWS,
                              chunk_rows=_SEL_CHUNK_ROWS),
            out_shape=jax.ShapeDtypeStruct((_SUBLANES, _LANES), jnp.float32),
            in_specs=[pl.BlockSpec(memory_space=pltpu.MemorySpace.SMEM),
                      pl.BlockSpec(memory_space=pltpu.MemorySpace.VMEM)],
            out_specs=pl.BlockSpec(memory_space=pltpu.MemorySpace.VMEM),
            compiler_params=pltpu.CompilerParams(vmem_limit_bytes=vmem_limit),
        )(k_arr, neg_loss_map)
        neg_loss_sum = sel[0, 0]
    else:
        # Fallback for maps too large to sit in VMEM: plain-XLA 31-step bit
        # search (multiple HBM passes).
        # TODO(synk): replace with a packed-uint16 coarse-key Pallas pass +
        # low-bit refinement to keep ~2 HBM passes for arbitrarily large maps.
        flat = neg_loss_map.reshape(-1)
        keys = jnp.maximum(lax.bitcast_convert_type(flat, jnp.int32), 0)
        k = negative_count

        def _bit_step(i, t):
            cand = t | (jnp.int32(1) << (30 - i))
            c = jnp.sum((keys >= cand).astype(jnp.int32))
            return jnp.where(c >= k, cand, t)

        t_key = lax.fori_loop(0, 31, _bit_step, jnp.int32(0))
        above = keys > t_key
        count_above = jnp.sum(above.astype(jnp.int32))
        sum_above = jnp.sum(jnp.where(above, flat, 0.0))
        t_val = jnp.max(jnp.where(keys == t_key, flat, 0.0))
        neg_loss_sum = sum_above + (k - count_above).astype(jnp.float32) * t_val

    denom = (positive_count + negative_count).astype(jnp.float32) + jnp.float32(eps)
    return (pos_loss_sum + neg_loss_sum) / denom


# ----------------------------------------------------------------------------
# BaseLoss.forward
# ----------------------------------------------------------------------------
def base_loss_forward(pred, batch):
    """pred: dict with 'binary' (N,1,H,W); batch: dict with 'gt','mask' (N,1,H,W)."""
    bce_loss = balance_cross_entropy_loss(pred["binary"], batch["gt"], batch["mask"])
    loss = bce_loss
    metrics = dict(bce_loss=bce_loss)
    return loss, metrics


# ----------------------------------------------------------------------------
# Pure-JAX reference (mirrors the PyTorch code, incl. full sort) for checking
# ----------------------------------------------------------------------------
def _reference_base_loss(pred, batch, negative_ratio=3.0, eps=1e-6):
    p = pred["binary"].astype(jnp.float32)
    gt = batch["gt"].astype(jnp.float32)
    mask = batch["mask"].astype(jnp.float32)
    pos = gt * mask
    neg = (1.0 - gt) * mask
    pos_cnt = jnp.floor(jnp.sum(pos)).astype(jnp.int32)
    neg_cnt = jnp.minimum(
        jnp.floor(jnp.sum(neg)).astype(jnp.int32),
        jnp.floor(pos_cnt.astype(jnp.float32) * negative_ratio).astype(jnp.int32))
    log_p = jnp.maximum(jnp.log(p), -100.0)
    log_1mp = jnp.maximum(jnp.log(1.0 - p), -100.0)
    loss = -(gt * log_p + (1.0 - gt) * log_1mp)
    pos_loss_sum = jnp.sum(loss * pos)
    flat = (loss * neg).reshape(-1)
    sorted_desc = -jnp.sort(-flat)
    idx = jnp.arange(flat.shape[0], dtype=jnp.int32)
    neg_loss_sum = jnp.sum(jnp.where(idx < neg_cnt, sorted_desc, 0.0))
    denom = (pos_cnt + neg_cnt).astype(jnp.float32) + jnp.float32(eps)
    return (pos_loss_sum + neg_loss_sum) / denom


if __name__ == "__main__":
    key = jax.random.PRNGKey(0)
    k_pred, k_gt, k_mask, k_rest = jax.random.split(key, 4)

    # --- case 1: small single-tile, VMEM-resident top-k ----------------------
    N, C, H, W = 2, 1, 16, 128
    pred_binary = jax.nn.sigmoid(
        jax.random.normal(k_pred, (N, C, H, W), dtype=jnp.float32))
    gt = (jax.random.uniform(k_gt, (N, C, H, W)) > 0.8).astype(jnp.float32)
    mask = (jax.random.uniform(k_mask, (N, C, H, W)) > 0.1).astype(jnp.float32)
    pred = {"binary": pred_binary}
    batch = {"gt": gt, "mask": mask}

    loss, metrics = base_loss_forward(pred, batch)
    loss = jax.block_until_ready(loss)
    _ = jax.block_until_ready(metrics["bce_loss"])
    ref = jax.block_until_ready(_reference_base_loss(pred, batch))
    np.testing.assert_allclose(np.asarray(loss), np.asarray(ref),
                               rtol=1e-4, atol=1e-5)

    # --- case 2: multi-step "parallel" grid (forced small tiles) -------------
    kp, kg, km = jax.random.split(k_rest, 3)
    p2 = jax.nn.sigmoid(jax.random.normal(kp, (2, 1, 128, 128), jnp.float32))
    g2 = (jax.random.uniform(kg, (2, 1, 128, 128)) > 0.85).astype(jnp.float32)
    m2 = (jax.random.uniform(km, (2, 1, 128, 128)) > 0.05).astype(jnp.float32)
    out2 = jax.block_until_ready(
        balance_cross_entropy_loss(p2, g2, m2, max_tile_elems=4096))
    ref2 = jax.block_until_ready(
        _reference_base_loss({"binary": p2}, {"gt": g2, "mask": m2}))
    np.testing.assert_allclose(np.asarray(out2), np.asarray(ref2),
                               rtol=1e-4, atol=1e-5)

    # --- case 3: ragged rows (padded tiling path) + int8 gt/mask -------------
    kp, kg, km = jax.random.split(jax.random.PRNGKey(7), 3)
    p3 = jax.nn.sigmoid(jax.random.normal(kp, (2, 1, 40, 128), jnp.float32))
    g3 = (jax.random.uniform(kg, (2, 1, 40, 128)) > 0.8).astype(jnp.float32)
    m3 = (jax.random.uniform(km, (2, 1, 40, 128)) > 0.1).astype(jnp.float32)
    out3 = jax.block_until_ready(
        balance_cross_entropy_loss(p3, g3.astype(jnp.int8), m3.astype(jnp.int8)))
    ref3 = jax.block_until_ready(
        _reference_base_loss({"binary": p3}, {"gt": g3, "mask": m3}))
    np.testing.assert_allclose(np.asarray(out3), np.asarray(ref3),
                               rtol=1e-4, atol=1e-5)

    # --- case 4: forced plain-XLA top-k fallback (huge-map path) -------------
    out4 = jax.block_until_ready(
        balance_cross_entropy_loss(pred_binary, gt, mask, topk_in_pallas=False))
    np.testing.assert_allclose(np.asarray(out4), np.asarray(ref),
                               rtol=1e-4, atol=1e-5)

    # --- case 5: bf16 pred cast in-kernel (loose numerical check) ------------
    out5 = jax.block_until_ready(
        balance_cross_entropy_loss(pred_binary.astype(jnp.bfloat16), gt, mask))
    assert np.isfinite(np.asarray(out5))
    np.testing.assert_allclose(np.asarray(out5), np.asarray(ref), rtol=0.1)

    print("KERNEL_OK")
</pallas_src>

<mosaic_0001>
module attributes {stable_mosaic.version = 11 : i64} {
  func.func @_balance_bce_kernel(%arg0: i32, %arg1: memref<32x128xf32, #tpu.memory_space<vmem>>, %arg2: memref<32x128xf32, #tpu.memory_space<vmem>>, %arg3: memref<32x128xf32, #tpu.memory_space<vmem>>, %arg4: memref<32x128xf32, #tpu.memory_space<vmem>>, %arg5: memref<1x8x128xf32, #tpu.memory_space<vmem>>) attributes {dimension_semantics = [#tpu.dimension_semantics<parallel>], iteration_bounds = array<i64: 1>, scalar_prefetch = 0 : i64, scratch_operands = 0 : i64, tpu.core_type = #tpu.core_type<tc>, window_params = [{transform_indices = @transform_0, window_bounds = array<i64: 32, 128>}, {transform_indices = @transform_1, window_bounds = array<i64: 32, 128>}, {transform_indices = @transform_2, window_bounds = array<i64: 32, 128>}, {transform_indices = @transform_3, window_bounds = array<i64: 32, 128>}, {transform_indices = @transform_4, window_bounds = array<i64: 1, 8, 128>}]} {
    %c0 = arith.constant 0 : index
    %c0_0 = arith.constant 0 : index
    %0 = vector.load %arg1[%c0, %c0_0] : memref<32x128xf32, #tpu.memory_space<vmem>>, vector<32x128xf32>
    %c0_1 = arith.constant 0 : index
    %c0_2 = arith.constant 0 : index
    %1 = vector.load %arg2[%c0_1, %c0_2] : memref<32x128xf32, #tpu.memory_space<vmem>>, vector<32x128xf32>
    %c0_3 = arith.constant 0 : index
    %c0_4 = arith.constant 0 : index
    %2 = vector.load %arg3[%c0_3, %c0_4] : memref<32x128xf32, #tpu.memory_space<vmem>>, vector<32x128xf32>
    %cst = arith.constant 0.000000e+00 : f32
    %cst_5 = arith.constant 1.000000e+00 : f32
    %3 = vector.broadcast %cst : f32 to vector<32x128xf32>
    %4 = arith.maximumf %3, %0 : vector<32x128xf32>
    %5 = vector.broadcast %cst_5 : f32 to vector<32x128xf32>
    %6 = arith.minimumf %5, %4 : vector<32x128xf32>
    %7 = arith.mulf %1, %2 : vector<32x128xf32>
    %8 = arith.subf %2, %7 : vector<32x128xf32>
    %9 = math.log %6 : vector<32x128xf32>
    %cst_6 = arith.constant -1.000000e+02 : f32
    %10 = vector.broadcast %cst_6 : f32 to vector<32x128xf32>
    %11 = arith.maximumf %9, %10 : vector<32x128xf32>
    %cst_7 = arith.constant 1.000000e+00 : f32
    %12 = vector.broadcast %cst_7 : f32 to vector<32x128xf32>
    %13 = arith.subf %12, %6 : vector<32x128xf32>
    %14 = math.log %13 : vector<32x128xf32>
    %cst_8 = arith.constant -1.000000e+02 : f32
    %15 = vector.broadcast %cst_8 : f32 to vector<32x128xf32>
    %16 = arith.maximumf %14, %15 : vector<32x128xf32>
    %17 = arith.mulf %1, %11 : vector<32x128xf32>
    %cst_9 = arith.constant 1.000000e+00 : f32
    %18 = vector.broadcast %cst_9 : f32 to vector<32x128xf32>
    %19 = arith.subf %18, %1 : vector<32x128xf32>
    %20 = arith.mulf %19, %16 : vector<32x128xf32>
    %21 = arith.addf %17, %20 : vector<32x128xf32>
    %cst_10 = arith.constant 0.000000e+00 : f32
    %22 = vector.broadcast %cst_10 : f32 to vector<32x128xf32>
    %23 = arith.subf %22, %21 : vector<32x128xf32>
    %24 = arith.mulf %23, %8 : vector<32x128xf32>
    %c0_11 = arith.constant 0 : index
    %c0_12 = arith.constant 0 : index
    %25 = vector.load %arg4[%c0_11, %c0_12] : memref<32x128xf32, #tpu.memory_space<vmem>>, vector<32x128xf32>
    tpu.vector_store %arg4[%c0_11, %c0_12], %24 {strides = array<i32>} : memref<32x128xf32, #tpu.memory_space<vmem>>, vector<32x128xf32>,
    %26 = tpu.iota {dimensions = array<i32: 0>} : vector<8x128xi32>
    %c0_i32 = arith.constant 0 : i32
    %27 = vector.broadcast %c0_i32 : i32 to vector<8x128xi32>
    %28 = arith.cmpi eq, %26, %27 : vector<8x128xi32>
    %29 = arith.mulf %23, %7 : vector<32x128xf32>
    %30 = vector.shape_cast %29 : vector<32x128xf32> to vector<1x32x128xf32>
    %cst_13 = arith.constant dense<0.000000e+00> : vector<1xf32>
    %31 = vector.multi_reduction <add>, %30, %cst_13 [1, 2] : vector<1x32x128xf32> to vector<1xf32>
    %32 = vector.shape_cast %31 : vector<1xf32> to vector<1x1x1xf32>
    %33 = vector.extract %32[0, 0, 0] : f32 from vector<1x1x1xf32>
    %c1_i32 = arith.constant 1 : i32
    %34 = vector.broadcast %c1_i32 : i32 to vector<8x128xi32>
    %35 = arith.cmpi eq, %26, %34 : vector<8x128xi32>
    %36 = vector.shape_cast %7 : vector<32x128xf32> to vector<1x32x128xf32>
    %cst_14 = arith.constant dense<0.000000e+00> : vector<1xf32>
    %37 = vector.multi_reduction <add>, %36, %cst_14 [1, 2] : vector<1x32x128xf32> to vector<1xf32>
    %38 = vector.shape_cast %37 : vector<1xf32> to vector<1x1x1xf32>
    %39 = vector.extract %38[0, 0, 0] : f32 from vector<1x1x1xf32>
    %40 = vector.shape_cast %8 : vector<32x128xf32> to vector<1x32x128xf32>
    %cst_15 = arith.constant dense<0.000000e+00> : vector<1xf32>
    %41 = vector.multi_reduction <add>, %40, %cst_15 [1, 2] : vector<1x32x128xf32> to vector<1xf32>
    %42 = vector.shape_cast %41 : vector<1xf32> to vector<1x1x1xf32>
    %43 = vector.extract %42[0, 0, 0] : f32 from vector<1x1x1xf32>
    %44 = vector.broadcast %39 : f32 to vector<8x128xf32>
    %45 = vector.broadcast %43 : f32 to vector<8x128xf32>
    %46 = arith.select %35, %44, %45 : vector<8x128xi1>, vector<8x128xf32>
    %47 = vector.broadcast %33 : f32 to vector<8x128xf32>
    %48 = arith.select %28, %47, %46 : vector<8x128xi1>, vector<8x128xf32>
    %c0_16 = arith.constant 0 : index
    %c0_17 = arith.constant 0 : index
    %c0_18 = arith.constant 0 : index
    %49 = vector.load %arg5[%c0_16, %c0_17, %c0_18] : memref<1x8x128xf32, #tpu.memory_space<vmem>>, vector<1x8x128xf32>
    %50 = vector.shape_cast %49 : vector<1x8x128xf32> to vector<8x128xf32>
    %51 = vector.shape_cast %48 : vector<8x128xf32> to vector<1x8x128xf32>
    tpu.vector_store %arg5[%c0_16, %c0_17, %c0_18], %51 {strides = array<i32>} : memref<1x8x128xf32, #tpu.memory_space<vmem>>, vector<1x8x128xf32>,
    return
  }
  func.func @transform_0(%arg0: i32) -> (i32, i32) {
    %c0_i32 = arith.constant 0 : i32
    %c0_i32_0 = arith.constant 0 : i32
    return %arg0, %c0_i32 : i32, i32
  }
  func.func @transform_1(%arg0: i32) -> (i32, i32) {
    %c0_i32 = arith.constant 0 : i32
    %c0_i32_0 = arith.constant 0 : i32
    return %arg0, %c0_i32 : i32, i32
  }
  func.func @transform_2(%arg0: i32) -> (i32, i32) {
    %c0_i32 = arith.constant 0 : i32
    %c0_i32_0 = arith.constant 0 : i32
    return %arg0, %c0_i32 : i32, i32
  }
  func.func @transform_3(%arg0: i32) -> (i32, i32) {
    %c0_i32 = arith.constant 0 : i32
    %c0_i32_0 = arith.constant 0 : i32
    return %arg0, %c0_i32 : i32, i32
  }
  func.func @transform_4(%arg0: i32) -> (i32, i32, i32) {
    %c0_i32 = arith.constant 0 : i32
    %c0_i32_0 = arith.constant 0 : i32
    %c0_i32_1 = arith.constant 0 : i32
    return %arg0, %c0_i32, %c0_i32_0 : i32, i32, i32
  }
}

module attributes {stable_mosaic.version = 11 : i64} {
  func.func @_topk_neg_sum_kernel(%arg0: memref<1xi32, #tpu.memory_space<smem>>, %arg1: memref<32x128xf32, #tpu.memory_space<vmem>>, %arg2: memref<8x128xf32, #tpu.memory_space<vmem>>) attributes {dimension_semantics = [], scalar_prefetch = 0 : i64, scratch_operands = 0 : i64, tpu.core_type = #tpu.core_type<tc>} {
    %c0 = arith.constant 0 : index
    %0 = memref.load %arg0[%c0] : memref<1xi32, #tpu.memory_space<smem>>
    %c0_i32 = arith.constant 0 : i32
    %c0_i32_0 = arith.constant 0 : i32
    %c31_i32 = arith.constant 31 : i32
    %1 = arith.addi %c0_i32_0, %c31_i32 : i32
    %c1_i32 = arith.constant 1 : i32
    %2 = scf.for %arg3 = %c0_i32_0 to %1 step %c1_i32 iter_args(%arg4 = %c0_i32) -> (i32)  : i32 {
      %c30_i32 = arith.constant 30 : i32
      %40 = arith.subi %c30_i32, %arg3 : i32
      %c1_i32_15 = arith.constant 1 : i32
      %41 = arith.shli %c1_i32_15, %40 : i32
      %42 = arith.ori %arg4, %41 : i32
      %c0_i32_16 = arith.constant 0 : i32
      %c0_i32_17 = arith.constant 0 : i32
      %c32_i32_18 = arith.constant 32 : i32
      %43 = arith.muli %c0_i32_17, %c32_i32_18 : i32
      %44 = tpu.assume_multiple %43, 32 : i32
      %45 = arith.index_cast %44 : i32 to index
      %c0_19 = arith.constant 0 : index
      %46 = vector.load %arg1[%45, %c0_19] : memref<32x128xf32, #tpu.memory_space<vmem>>, vector<32x128xf32>
      %47 = tpu.bitcast %46 : vector<32x128xf32> -> vector<32x128xi32>
      %c0_i32_20 = arith.constant 0 : i32
      %48 = vector.broadcast %c0_i32_20 : i32 to vector<32x128xi32>
      %49 = arith.maxsi %47, %48 : vector<32x128xi32>
      %50 = vector.broadcast %42 : i32 to vector<32x128xi32>
      %51 = arith.cmpi sge, %49, %50 : vector<32x128xi32>
      %52 = arith.extui %51 : vector<32x128xi1> to vector<32x128xi32>
      %53 = vector.shape_cast %52 : vector<32x128xi32> to vector<1x32x128xi32>
      %cst_21 = arith.constant dense<0> : vector<1xi32>
      %54 = vector.multi_reduction <add>, %53, %cst_21 [1, 2] : vector<1x32x128xi32> to vector<1xi32>
      %55 = vector.shape_cast %54 : vector<1xi32> to vector<1x1x1xi32>
      %56 = vector.extract %55[0, 0, 0] : i32 from vector<1x1x1xi32>
      %57 = arith.addi %c0_i32_16, %56 : i32
      %c1_i32_22 = arith.constant 1 : i32
      %58 = arith.cmpi sge, %57, %0 : i32
      %59 = arith.select %58, %42, %arg4 : i32
      scf.yield %59 : i32
    }
    %c31_i32_1 = arith.constant 31 : i32
    %c0_i32_2 = arith.constant 0 : i32
    %cst = arith.constant 0.000000e+00 : f32
    %cst_3 = arith.constant 0.000000e+00 : f32
    %c0_i32_4 = arith.constant 0 : i32
    %c32_i32 = arith.constant 32 : i32
    %3 = arith.muli %c0_i32_4, %c32_i32 : i32
    %4 = tpu.assume_multiple %3, 32 : i32
    %5 = arith.index_cast %4 : i32 to index
    %c0_5 = arith.constant 0 : index
    %6 = vector.load %arg1[%5, %c0_5] : memref<32x128xf32, #tpu.memory_space<vmem>>, vector<32x128xf32>
    %7 = tpu.bitcast %6 : vector<32x128xf32> -> vector<32x128xi32>
    %c0_i32_6 = arith.constant 0 : i32
    %8 = vector.broadcast %c0_i32_6 : i32 to vector<32x128xi32>
    %9 = arith.maxsi %7, %8 : vector<32x128xi32>
    %10 = vector.broadcast %2 : i32 to vector<32x128xi32>
    %11 = arith.cmpi sgt, %9, %10 : vector<32x128xi32>
    %12 = arith.extui %11 : vector<32x128xi1> to vector<32x128xi32>
    %13 = vector.shape_cast %12 : vector<32x128xi32> to vector<1x32x128xi32>
    %cst_7 = arith.constant dense<0> : vector<1xi32>
    %14 = vector.multi_reduction <add>, %13, %cst_7 [1, 2] : vector<1x32x128xi32> to vector<1xi32>
    %15 = vector.shape_cast %14 : vector<1xi32> to vector<1x1x1xi32>
    %16 = vector.extract %15[0, 0, 0] : i32 from vector<1x1x1xi32>
    %17 = arith.addi %c0_i32_2, %16 : i32
    %cst_8 = arith.constant 0.000000e+00 : f32
    %18 = vector.broadcast %cst_8 : f32 to vector<32x128xf32>
    %19 = arith.select %11, %6, %18 : vector<32x128xi1>, vector<32x128xf32>
    %20 = vector.shape_cast %19 : vector<32x128xf32> to vector<1x32x128xf32>
    %cst_9 = arith.constant dense<0.000000e+00> : vector<1xf32>
    %21 = vector.multi_reduction <add>, %20, %cst_9 [1, 2] : vector<1x32x128xf32> to vector<1xf32>
    %22 = vector.shape_cast %21 : vector<1xf32> to vector<1x1x1xf32>
    %23 = vector.extract %22[0, 0, 0] : f32 from vector<1x1x1xf32>
    %24 = arith.addf %cst, %23 : f32
    %25 = vector.broadcast %2 : i32 to vector<32x128xi32>
    %26 = arith.cmpi eq, %9, %25 : vector<32x128xi32>
    %cst_10 = arith.constant 0.000000e+00 : f32
    %27 = vector.broadcast %cst_10 : f32 to vector<32x128xf32>
    %28 = arith.select %26, %6, %27 : vector<32x128xi1>, vector<32x128xf32>
    %29 = vector.shape_cast %28 : vector<32x128xf32> to vector<1x32x128xf32>
    %cst_11 = arith.constant dense<0xFF800000> : vector<1xf32>
    %30 = vector.multi_reduction <maximumf>, %29, %cst_11 [1, 2] : vector<1x32x128xf32> to vector<1xf32>
    %31 = vector.shape_cast %30 : vector<1xf32> to vector<1x1x1xf32>
    %32 = vector.extract %31[0, 0, 0] : f32 from vector<1x1x1xf32>
    %33 = arith.maximumf %cst_3, %32 : f32
    %c1_i32_12 = arith.constant 1 : i32
    %34 = arith.subi %0, %17 : i32
    %35 = arith.sitofp %34 : i32 to f32
    %36 = arith.mulf %35, %33 : f32
    %37 = arith.addf %24, %36 : f32
    %38 = vector.broadcast %37 : f32 to vector<8x128xf32>
    %c0_13 = arith.constant 0 : index
    %c0_14 = arith.constant 0 : index
    %39 = vector.load %arg2[%c0_13, %c0_14] : memref<8x128xf32, #tpu.memory_space<vmem>>, vector<8x128xf32>
    tpu.vector_store %arg2[%c0_13, %c0_14], %38 {strides = array<i32>} : memref<8x128xf32, #tpu.memory_space<vmem>>, vector<8x128xf32>,
    return
  }
}

</mosaic_0001>

<bundles_post_ra>
// kernel: balance_cross_entropy_loss.3
= control target key start
LH: loop header
LB: loop body
LE: loop exit
PB: predicated region body
PF: predicated region fallthrough
CT: control target
= control target key end

     0   :  { %s238_s9 = smov 0   ;;  %s240_s10 = smov 0   ;;  %s293_s0 = inlined_call_operand.<no memory space> [shape: s32[1], index: 0, kind: input, shape index: {}]   ;;  %s294_s1 = inlined_call_operand.vmem [shape: f32[32,128], index: 1, kind: input, shape index: {}]   ;;  %s295_s2 = inlined_call_operand.vmem [shape: f32[8,128], index: 2, kind: output, shape index: {}]  }
   0x1 LB: > { %v23_v0 = vld [vmem:[%s294_s1] sm:$0xff]  ;;  %v24_v1 = vld [vmem:[%s294_s1 + $0x8] sm:$0xff]  ;;  %v25_v2 = vld [vmem:[%s294_s1 + $0x10] sm:$0xff]  ;;  %s20_s19 = ssub.s32 30, %s217_s10  ;;  %s219_s20 = smov 1   ;;  %v220_v9 = vmov 0   ;;  %s217_s10 = sphi %s240_s10, %s18_s10   ;;  %s213_s9 = sphi %s238_s9, %s296_s9  }
   0x2   : > { %v26_v3 = vld [vmem:[%s294_s1 + $0x18] sm:$0xff]  ;;  %vm31_vm0 = vcmp.gt.s32.totalorder %v23_v0, 0  ;;  %vm33_vm1 = vcmp.gt.s32.totalorder %v24_v1, 0  ;;  %vm35_vm2 = vcmp.gt.s32.totalorder %v25_v2, 0  ;;  %s21_s21 = sshll.u32 %s219_s20, %s20_s19  ;;  %s18_s10 = sadd.s32 1, %s217_s10  }
   0x3   : > { %vm37_vm3 = vcmp.gt.s32.totalorder %v26_v3, 0  ;;  %v32_v4 = vsel %vm31_vm0, %v23_v0, 0  ;;  %v34_v5 = vsel %vm33_vm1, %v24_v1, 0  ;;  %v36_v6 = vsel %vm35_vm2, %v25_v2, 0  ;;  %s262_s22 = sor.u32 %s213_s9, %s21_s21  ;;  %p15_p1 = scmp.ge.s32.totalorder %s18_s10, 31  }
   0x4   : > { %v38_v7 = vsel %vm37_vm3, %v26_v3, 0  ;;  %v39_v8 = vstv %s262_s22  ;;  %v72_v33 = vld [vmem:[%s294_s1] sm:$0xff] (%p15_p1)  ;;  %v73_v34 = vld [vmem:[%s294_s1 + $0x8] sm:$0xff] (%p15_p1)  ;;  %v74_v35 = vld [vmem:[%s294_s1 + $0x10] sm:$0xff] (%p15_p1)  ;;  %v221_v42 = vmov (%p15_p1), 0   ;;  %s222_s12 = smov (%p15_p1), 0.0  }
   0x5   : > { %vm40_vm4 = vcmp.ge.s32.totalorder %v32_v4, %v39_v8  ;;  %vm41_vm5 = vcmp.ge.s32.totalorder %v34_v5, %v39_v8  ;;  %vm42_vm6 = vcmp.ge.s32.totalorder %v36_v6, %v39_v8  ;;  %vm43_vm7 = vcmp.ge.s32.totalorder %v38_v7, %v39_v8  ;;  %v75_v37 = vld [vmem:[%s294_s1 + $0x18] sm:$0xff] (%p15_p1) }
   0x6   : > { %v44_v10 = vsel %vm40_vm4, 1, %v220_v9  ;;  %v45_v11 = vsel %vm41_vm5, 1, %v220_v9  ;;  %v46_v12 = vsel %vm42_vm6, 1, %v220_v9  ;;  %v47_v13 = vsel %vm43_vm7, 1, %v220_v9 }
   0x7   : > { %v48_v14 = vadd.s32 %v45_v11, %v44_v10  ;;  %v49_v15 = vadd.s32 %v47_v13, %v46_v12  ;;  %vm80_vm8 = vcmp.gt.s32.totalorder (%p15_p1), %v72_v33, 0  ;;  %vm82_vm9 = vcmp.gt.s32.totalorder (%p15_p1), %v73_v34, 0 }
   0x8   :  { %vm84_vm10 = vcmp.gt.s32.totalorder (%p15_p1), %v74_v35, 0  ;;  %v81_v38 = vsel (%p15_p1), %vm80_vm8, %v72_v33, 0  ;;  %v83_v39 = vsel (%p15_p1), %vm82_vm9, %v73_v34, 0  ;;  %vm86_vm11 = vcmp.gt.s32.totalorder (%p15_p1), %v75_v37, 0 }
   0x9   : > { %v50_v16 = vadd.s32 %v49_v15, %v48_v14  ;;  %v85_v40 = vsel (%p15_p1), %vm84_vm10, %v74_v35, 0  ;;  %v87_v41 = vsel (%p15_p1), %vm86_vm11, %v75_v37, 0 }
   0xb   : > { %v52_v17 = vshrl.u32 %v50_v16, 16  ;;  %v51_v18 = vand.u32 65535, %v50_v16 }
   0xd   : > { %v54_v19 = vcvt.s32.f32 %v52_v17  ;;  %v53_v20 = vcvt.s32.f32 %v51_v18 }
   0xf   : > { %57 = vadd.xlane.f32.xlu0 %v54_v19 }
  0x13   : > { %55 = vadd.xlane.f32.xlu0 %v53_v20 }
  0x9c   : > { %v58_v21 = vpop.xlane.xlu0 %57 }
  0x9d   : > { %v60_v22 = vcvt.f32.s32 %v58_v21 }
  0x9f   : > { %v61_v24 = vshll.u32 %v60_v22, 16 }
  0xa0   : > { %v56_v23 = vpop.xlane.xlu0 %55 }
  0xa1   : > { %v59_v25 = vcvt.f32.s32 %v56_v23 }
  0xa3   : > { %v62_v26 = vadd.s32 %v61_v24, %v59_v25 }
  0xa5   : > { %v63_v27 = vrot.slane %v62_v26, 4 }
  0xa7   : > { %v64_v28 = vadd.s32 %v63_v27, %v62_v26 }
  0xa9   : > { %v65_v29 = vrot.slane %v64_v28, 2 }
  0xab   : > { %v66_v30 = vadd.s32 %v65_v29, %v64_v28 }
  0xad   : > { %v67_v31 = vrot.slane %v66_v30, 1 }
  0xaf   : > { %v68_v32 = vadd.s32 %v67_v31, %v66_v30 }
  0xb1   : > { %175 = vpush %v68_v32 }
  0xe0   :  { %17 = sbr.rel (!%p15_p1) target bundleno = 1 (0x1), region = 35 }
  0xe2   : > { %s176_s23 = spop %175 }
  0xe3   : > { %p70_p0 = scmp.ge.s32.totalorder %s176_s23, %s293_s0 }
  0xe5   : > { %s298_s22 = smov (!%p70_p0, %s262_s22), %s213_s9 }
  0xe6   : > { %s296_s9 = smov %s298_s22  ;;  %v88_v36 = vstv (%p15_p1), %s298_s22 }
  0xe7   :  { %vm89_vm12 = vcmp.gt.s32.totalorder %v81_v38, %v88_v36  ;;  %vm90_vm13 = vcmp.gt.s32.totalorder %v83_v39, %v88_v36  ;;  %vm91_vm14 = vcmp.gt.s32.totalorder %v85_v40, %v88_v36  ;;  %vm92_vm15 = vcmp.gt.s32.totalorder %v87_v41, %v88_v36 }
  0xe8   :  { %v95_v43 = vsel %vm91_vm14, 1, %v221_v42  ;;  %v119_v44 = vsel %vm89_vm12, %v72_v33, 0.0  ;;  %v120_v45 = vsel %vm90_vm13, %v73_v34, 0.0  ;;  %v96_v46 = vsel %vm92_vm15, 1, %v221_v42 }
  0xe9   :  { %v121_v47 = vsel %vm91_vm14, %v74_v35, 0.0  ;;  %v122_v48 = vsel %vm92_vm15, %v75_v37, 0.0  ;;  %v123_v49 = vadd.f32 %v120_v45, %v119_v44  ;;  %v98_v50 = vadd.s32 %v96_v46, %v95_v43 }
  0xea   :  { %vm139_vm0 = vcmp.eq.s32.totalorder %v87_v41, %v88_v36  ;;  %v93_v51 = vsel %vm89_vm12, 1, %v221_v42  ;;  %v94_v52 = vsel %vm90_vm13, 1, %v221_v42  ;;  %vm136_vm1 = vcmp.eq.s32.totalorder %v81_v38, %v88_v36 }
  0xeb   :  { %v124_v53 = vadd.f32 %v123_v49, %v121_v47  ;;  %v97_v54 = vadd.s32 %v94_v52, %v93_v51  ;;  %vm137_vm2 = vcmp.eq.s32.totalorder %v83_v39, %v88_v36  ;;  %vm138_vm3 = vcmp.eq.s32.totalorder %v85_v40, %v88_v36 }
  0xec   :  { %v140_v55 = vsel %vm136_vm1, %v72_v33, 0.0  ;;  %v141_v56 = vsel %vm137_vm2, %v73_v34, 0.0  ;;  %v143_v57 = vsel %vm139_vm0, %v75_v37, 0.0  ;;  %v142_v60 = vsel %vm138_vm3, %v74_v35, 0.0 }
  0xed   :  { %v125_v58 = vadd.f32 %v124_v53, %v122_v48  ;;  %v99_v59 = vadd.s32 %v98_v50, %v97_v54  ;;  %v144_v61 = vmax.f32 %v140_v55, %v141_v56  ;;  %v145_v62 = vmax.f32 %v142_v60, %v143_v57 }
  0xef   :  { %126 = vadd.xlane.f32.xlu1 %v125_v58  ;;  %v101_v63 = vshrl.u32 %v99_v59, 16  ;;  %v100_v0 = vand.u32 65535, %v99_v59  ;;  %v146_v1 = vmax.f32 %v144_v61, %v145_v62 }
  0xf1   :  { %v103_v2 = vcvt.s32.f32 %v101_v63  ;;  %v102_v3 = vcvt.s32.f32 %v100_v0 }
  0xf3   :  { %106 = vadd.xlane.f32.xlu0 %v103_v2  ;;  %147 = vmax.xlane.f32.xlu1 %v146_v1 }
  0xf7   :  { %104 = vadd.xlane.f32.xlu0 %v102_v3 }
 0x17c   :  { %v127_v4 = vpop.xlane.xlu1 %126 }
 0x17d   :  { %v128_v5 = vrot.slane %v127_v4, 4 }
 0x17f   :  { %v129_v10 = vadd.f32 %v128_v5, %v127_v4 }
 0x180   :  { %v107_v6 = vpop.xlane.xlu0 %106  ;;  %v148_v7 = vpop.xlane.xlu1 %147 }
 0x181   :  { %v109_v8 = vcvt.f32.s32 %v107_v6  ;;  %v149_v9 = vrot.slane %v148_v7, 4  ;;  %v130_v16 = vrot.slane %v129_v10, 2 }
 0x183   :  { %v110_v12 = vshll.u32 %v109_v8, 16  ;;  %v150_v13 = vmax.f32 %v148_v7, %v149_v9  ;;  %v131_v20 = vadd.f32 %v130_v16, %v129_v10 }
 0x184   :  { %v105_v11 = vpop.xlane.xlu0 %104 }
 0x185   :  { %v108_v14 = vcvt.f32.s32 %v105_v11  ;;  %v151_v17 = vrot.slane %v150_v13, 2  ;;  %v132_v24 = vrot.slane %v131_v20, 1 }
 0x187   :  { %v111_v15 = vadd.s32 %v110_v12, %v108_v14  ;;  %v152_v21 = vmax.f32 %v150_v13, %v151_v17  ;;  %v133_v28 = vadd.f32 %v132_v24, %v131_v20 }
 0x189   :  { %v112_v18 = vrot.slane %v111_v15, 4  ;;  %v153_v26 = vrot.slane %v152_v21, 1 }
 0x18b   :  { %v113_v19 = vadd.s32 %v112_v18, %v111_v15  ;;  %v154_v29 = vmax.f32 %v152_v21, %v153_v26 }
 0x18d   :  { %v114_v22 = vrot.slane %v113_v19, 2 }
 0x18f   :  { %v115_v23 = vadd.s32 %v114_v22, %v113_v19 }
 0x191   :  { %v116_v25 = vrot.slane %v115_v23, 1 }
 0x193   :  { %v117_v27 = vadd.s32 %v116_v25, %v115_v23 }
 0x195   :  { %177 = vpush %v117_v27 }
 0x196   :  { %179 = vpush %v133_v28 }
 0x197   :  { %181 = vpush %v154_v29 }
 0x1c6   :  { %s178_s1 = spop %177 }
 0x1c7   :  { %s157_s8 = ssub.s32 %s293_s0, %s178_s1  ;;  %s180_s9 = spop %179 }
 0x1c8   :  { %s158_s10 = scvt.s32.f32 %s157_s8  ;;  %s182_s11 = spop %181 }
 0x1c9   :  { %s156_s13 = smax.f32 %s222_s12, %s182_s11 }
 0x1ca   :  { %s159_s14 = smul.f32 %s158_s10, %s156_s13 }
 0x1cc   :  { %s160_s15 = sadd.f32 %s180_s9, %s159_s14 }
 0x1ce   :  { %v161_v30 = vstv %s160_s15 }
 0x1cf   :  { %162 = vst [vmem:[%s295_s2] sm:$0xff] %v161_v30 }

// kernel: balance_cross_entropy_loss.2
= control target key start
LH: loop header
LB: loop body
LE: loop exit
PB: predicated region body
PF: predicated region fallthrough
CT: control target
= control target key end

     0   :  { %10 = vsyncpa [#allocation3], 0  ;;  %s451_s0 = inlined_call_operand.hbm [shape: f32[32,128], index: 0, kind: input, shape index: {}]   ;;  %s452_s1 = inlined_call_operand.hbm [shape: f32[32,128], index: 1, kind: input, shape index: {}]   ;;  %s453_s2 = inlined_call_operand.hbm [shape: f32[32,128], index: 2, kind: input, shape index: {}]   ;;  %s454_s3 = inlined_call_operand.vmem [shape: f32[32,128], index: 3, kind: output, shape index: {0}]   ;;  %s455_s4 = inlined_call_operand.vmem [shape: f32[1,8,128], index: 4, kind: output, shape index: {1}]  }
   0x1   :  { %11 = vsyncpa [#allocation5], 0  ;;  %s298_s15 = smov [#allocation4]   ;;  %s299_s17 = smov [#allocation2]  }
   0x2   :  { %s29_s16 = sshll.u32 %s298_s15, 4  ;;  %s17_s18 = sshll.u32 %s299_s17, 4  ;;  %s30_s16 = int_to_ptr.vmem [resolvable:$true] %s29_s16  ;;  %s328_s18 = int_to_ptr.vmem [resolvable:$true] %s17_s18 }
   0x3   :  { %s228_s21 = scalar_lea.hbm %s452_s1, 512 }
   0x4   :  { %p229_p0 = scmp.ne.s32.totalorder %s452_s1, %s228_s21  ;;  %p232_p1 = scmp.lt.u32.totalorder %s228_s21, %s452_s1 }
   0x6   :  { %p234_p2 = pnand %p232_p1, %p229_p0 }
   0x8   :  { %237 = shalt.err (!%p234_p2)
}
   0x9   :  { %s238_s26 = scalar_lea.vmem %s30_s16, 512  ;;  %p243_p4 = scmp.lt.s32.totalorder %s30_s16, %s30_s16 }
   0xa   :  { %p239_p3 = scmp.ne.s32.totalorder %s30_s16, %s238_s26  ;;  %p244_p5 = scmp.lt.s32.totalorder %s238_s26, %s238_s26 }
   0xc   :  { %p245_p6 = por %p244_p5, %p243_p4 }
   0xe   :  { %p246_p7 = pnand %p245_p6, %p239_p3 }
  0x10   :  { %249 = shalt.err (!%p246_p7)
}
  0x11   :  { %s300_s27 = smov 128   ;;  %s301_s28 = smov 8  }
  0x12   :  { %35 = dma.hbm_to_vmem [thread:$0]  %s452_s1, 512, %s30_s16, [#allocation5], %s300_s27, %s300_s27, %s301_s28  }
  0x13   :  { %s250_s7 = scalar_lea.hbm %s451_s0, 512 }
  0x14   :  { %p251_p8 = scmp.ne.s32.totalorder %s451_s0, %s250_s7  ;;  %p254_p9 = scmp.lt.u32.totalorder %s250_s7, %s451_s0 }
  0x16   :  { %p256_p10 = pnand %p254_p9, %p251_p8 }
  0x18   :  { %259 = shalt.err (!%p256_p10)
}
  0x19   :  { %s260_s12 = scalar_lea.vmem %s328_s18, 512  ;;  %p265_p12 = scmp.lt.s32.totalorder %s328_s18, %s328_s18 }
  0x1a   :  { %p261_p11 = scmp.ne.s32.totalorder %s328_s18, %s260_s12  ;;  %p266_p13 = scmp.lt.s32.totalorder %s260_s12, %s260_s12 }
  0x1c   :  { %p267_p0 = por %p266_p13, %p265_p12 }
  0x1e   :  { %p268_p1 = pnand %p267_p0, %p261_p11 }
  0x20   :  { %271 = shalt.err (!%p268_p1)
}
  0x21   :  { %23 = dma.hbm_to_vmem [thread:$0]  %s451_s0, 512, %s328_s18, [#allocation3], %s300_s27, %s300_s27, %s301_s28  }
  0x22   :  { %s302_s14 = smov [#allocation6]   ;;  %s272_s19 = scalar_lea.hbm %s453_s2, 512 }
  0x23   :  { %s41_s15 = sshll.u32 %s302_s14, 4  ;;  %p273_p2 = scmp.ne.s32.totalorder %s453_s2, %s272_s19  ;;  %s42_s15 = int_to_ptr.vmem [resolvable:$true] %s41_s15 }
  0x24   :  { %p276_p3 = scmp.lt.u32.totalorder %s272_s19, %s453_s2 }
  0x26   :  { %p278_p4 = pnand %p276_p3, %p273_p2 }
  0x28   :  { %281 = shalt.err (!%p278_p4)
}
  0x29   :  { %s282_s24 = scalar_lea.vmem %s42_s15, 512  ;;  %p287_p6 = scmp.lt.s32.totalorder %s42_s15, %s42_s15 }
  0x2a   :  { %p283_p5 = scmp.ne.s32.totalorder %s42_s15, %s282_s24  ;;  %p288_p7 = scmp.lt.s32.totalorder %s282_s24, %s282_s24 }
  0x2c   :  { %p289_p8 = por %p288_p7, %p287_p6 }
  0x2e   :  { %p290_p9 = pnand %p289_p8, %p283_p5 }
  0x30   :  { %293 = shalt.err (!%p290_p9)
}
  0x31   :  { %47 = dma.hbm_to_vmem [thread:$0]  %s453_s2, 512, %s42_s15, [#allocation5], %s300_s27, %s300_s27, %s301_s28  }
  0x32   :  { %294 = dma.done.wait [#allocation3], 512  }
  0x33   :  { %295 = vsyncadd [#allocation3], 4294966784 }
  0x34   :  { %296 = dma.done.wait [#allocation5], 1024  }
  0x35   :  { %297 = vsyncadd [#allocation5], 4294966272  ;;  %v380_v0 = vld [vmem:[#allocation4] sm:$0xff]  ;;  %v382_v1 = vld [vmem:[#allocation4 + $0x8] sm:$0xff] }
  0x36   :  { %v384_v2 = vld [vmem:[#allocation4 + $0x10] sm:$0xff]  ;;  %v386_v3 = vld [vmem:[#allocation4 + $0x18] sm:$0xff]  ;;  %v65_v4 = vld [vmem:[#allocation6] sm:$0xff]  ;;  %v117_v47 = vsub.f32 1.0, %v380_v0  ;;  %v118_v51 = vsub.f32 1.0, %v382_v1 }
  0x37   :  { %v66_v5 = vld [vmem:[#allocation6 + $0x8] sm:$0xff]  ;;  %v67_v6 = vld [vmem:[#allocation6 + $0x10] sm:$0xff]  ;;  %v68_v7 = vld [vmem:[#allocation6 + $0x18] sm:$0xff]  ;;  %v389_v8 = vmul.f32 %v65_v4, %v380_v0  ;;  %v119_v55 = vsub.f32 1.0, %v384_v2  ;;  %v120_v59 = vsub.f32 1.0, %v386_v3 }
  0x38   :  { %v392_v9 = vmul.f32 %v66_v5, %v382_v1  ;;  %v57_v10 = vld [vmem:[#allocation2] sm:$0xff]  ;;  %v395_v11 = vmul.f32 %v67_v6, %v384_v2  ;;  %v398_v12 = vmul.f32 %v68_v7, %v386_v3  ;;  %v58_v13 = vld [vmem:[#allocation2 + $0x8] sm:$0xff]  ;;  %v59_v14 = vld [vmem:[#allocation2 + $0x10] sm:$0xff] }
  0x39   :  { %v60_v15 = vld [vmem:[#allocation2 + $0x18] sm:$0xff]  ;;  %v69_v16 = vmax.f32 %v57_v10, 0.0  ;;  %v401_v17 = vsub.f32 %v65_v4, %v389_v8  ;;  %v70_v19 = vmax.f32 %v58_v13, 0.0  ;;  %v71_v20 = vmax.f32 %v59_v14, 0.0 }
  0x3a   :  { %v404_v18 = vsub.f32 %v66_v5, %v392_v9  ;;  %v407_v21 = vsub.f32 %v67_v6, %v395_v11  ;;  %v72_v22 = vmax.f32 %v60_v15, 0.0  ;;  %v410_v24 = vsub.f32 %v68_v7, %v398_v12 }
  0x3b   :  { %v73_v23 = vmin.f32 %v69_v16, 1.0  ;;  %v74_v26 = vmin.f32 %v70_v19, 1.0  ;;  %v75_v27 = vmin.f32 %v71_v20, 1.0 }
  0x3c   :  { %v173_v25 = vadd.f32 %v404_v18, %v401_v17  ;;  %v76_v28 = vmin.f32 %v72_v22, 1.0 }
  0x3d   :  { %212 = vlog2.f32 %v73_v23  ;;  %v97_v29 = vsub.f32 1.0, %v73_v23  ;;  %v98_v31 = vsub.f32 1.0, %v74_v26  ;;  %v99_v32 = vsub.f32 1.0, %v75_v27 }
  0x3e   :  { %v174_v30 = vadd.f32 %v173_v25, %v407_v21  ;;  %214 = vlog2.f32 %v74_v26  ;;  %v100_v34 = vsub.f32 1.0, %v76_v28 }
  0x3f   :  { %216 = vlog2.f32 %v75_v27 }
  0x40   :  { %v175_v33 = vadd.f32 %v174_v30, %v410_v24  ;;  %218 = vlog2.f32 %v76_v28 }
  0x41   :  { %220 = vlog2.f32 %v97_v29 }
  0x42   :  { %176 = vadd.xlane.f32.xlu1 %v175_v33  ;;  %222 = vlog2.f32 %v98_v31 }
  0x43   :  { %224 = vlog2.f32 %v99_v32 }
  0x44   :  { %226 = vlog2.f32 %v100_v34 }
  0x47   :  { %v213_v35 = vpop.eup %212 }
  0x48   :  { %v215_v36 = vpop.eup %214  ;;  %v86_v37 = vmul.f32 0.6931472, %v213_v35 }
  0x49   :  { %v217_v38 = vpop.eup %216  ;;  %v88_v39 = vmul.f32 0.6931472, %v215_v36 }
  0x4a   :  { %v219_v40 = vpop.eup %218  ;;  %v90_v41 = vmul.f32 0.6931472, %v217_v38  ;;  %v93_v42 = vmax.f32 %v86_v37, -100.0 }
  0x4b   :  { %v221_v43 = vpop.eup %220  ;;  %v92_v44 = vmul.f32 0.6931472, %v219_v40  ;;  %v94_v45 = vmax.f32 %v88_v39, -100.0 }
  0x4c   :  { %v223_v46 = vpop.eup %222  ;;  %v95_v48 = vmax.f32 %v90_v41, -100.0  ;;  %v102_v49 = vmul.f32 0.6931472, %v221_v43  ;;  %v113_v58 = vmul.f32 %v93_v42, %v380_v0 }
  0x4d   :  { %v225_v50 = vpop.eup %224  ;;  %v96_v52 = vmax.f32 %v92_v44, -100.0  ;;  %v104_v53 = vmul.f32 0.6931472, %v223_v46  ;;  %v114_v62 = vmul.f32 %v94_v45, %v382_v1 }
  0x4e   :  { %v227_v54 = vpop.eup %226  ;;  %v106_v56 = vmul.f32 0.6931472, %v225_v50  ;;  %v109_v57 = vmax.f32 %v102_v49, -100.0  ;;  %v115_v4 = vmul.f32 %v95_v48, %v384_v2  ;;  %v141_v50 = vlaneseq }
  0x4f   :  { %v108_v60 = vmul.f32 0.6931472, %v227_v54  ;;  %v110_v61 = vmax.f32 %v104_v53, -100.0  ;;  %v116_v7 = vmul.f32 %v96_v52, %v386_v3  ;;  %v161_v3 = vadd.f32 %v392_v9, %v389_v8 }
  0x50   :  { %v111_v63 = vmax.f32 %v106_v56, -100.0  ;;  %v121_v5 = vmul.f32 %v117_v47, %v109_v57 }
  0x51   :  { %v112_v6 = vmax.f32 %v108_v60, -100.0  ;;  %v122_v10 = vmul.f32 %v118_v51, %v110_v61  ;;  %v142_v51 = vshrl.u32 %v141_v50, 7 }
  0x52   :  { %v123_v13 = vmul.f32 %v119_v55, %v111_v63  ;;  %v125_v14 = vadd.f32 %v121_v5, %v113_v58 }
  0x53   :  { %v124_v15 = vmul.f32 %v120_v59, %v112_v6  ;;  %v126_v16 = vadd.f32 %v122_v10, %v114_v62  ;;  %vm160_vm0 = vcmp.eq.s32.totalorder %v142_v51, 1  ;;  %vm143_vm1 = vcmp.eq.s32.totalorder %v142_v51, 0 }
  0x54   :  { %v127_v19 = vadd.f32 %v123_v13, %v115_v4  ;;  %v129_v0 = vsub.f32 0.0, %v125_v14 }
  0x55   :  { %v128_v20 = vadd.f32 %v124_v15, %v116_v7  ;;  %v130_v22 = vsub.f32 0.0, %v126_v16 }
  0x56   :  { %v131_v23 = vsub.f32 0.0, %v127_v19  ;;  %v133_v25 = vmul.f32 %v129_v0, %v401_v17  ;;  %v144_v1 = vmul.f32 %v129_v0, %v389_v8 }
  0x57   :  { %v132_v26 = vsub.f32 0.0, %v128_v20  ;;  %v134_v2 = vmul.f32 %v130_v22, %v404_v18  ;;  %v145_v27 = vmul.f32 %v130_v22, %v392_v9  ;;  %v162_v9 = vadd.f32 %v161_v3, %v395_v11 }
  0x58   :  { %v135_v28 = vmul.f32 %v131_v23, %v407_v21  ;;  %137 = vst [vmem:[%s454_s3] sm:$0xff] %v133_v25  ;;  %v146_v29 = vmul.f32 %v131_v23, %v395_v11 }
  0x59   :  { %v136_v17 = vmul.f32 %v132_v26, %v410_v24  ;;  %138 = vst [vmem:[%s454_s3 + $0x8] sm:$0xff] %v134_v2  ;;  %v147_v18 = vmul.f32 %v132_v26, %v398_v12  ;;  %v148_v30 = vadd.f32 %v145_v27, %v144_v1  ;;  %v163_v24 = vadd.f32 %v162_v9, %v398_v12 }
  0x5a   :  { %139 = vst [vmem:[%s454_s3 + $0x10] sm:$0xff] %v135_v28 }
  0x5b   :  { %140 = vst [vmem:[%s454_s3 + $0x18] sm:$0xff] %v136_v17  ;;  %v149_v8 = vadd.f32 %v148_v30, %v146_v29 }
  0x5d   :  { %v150_v21 = vadd.f32 %v149_v8, %v147_v18 }
  0x5f   :  { %151 = vadd.xlane.f32.xlu0 %v150_v21 }
  0x63   :  { %164 = vadd.xlane.f32.xlu0 %v163_v24 }
  0xcf   :  { %v177_v31 = vpop.xlane.xlu1 %176 }
  0xd0   :  { %v178_v32 = vrot.slane %v177_v31, 4 }
  0xd2   :  { %v179_v33 = vadd.f32 %v178_v32, %v177_v31 }
  0xd4   :  { %v180_v37 = vrot.slane %v179_v33, 2 }
  0xd6   :  { %v181_v43 = vadd.f32 %v180_v37, %v179_v33 }
  0xd8   :  { %v182_v47 = vrot.slane %v181_v43, 1 }
  0xda   :  { %v183_v49 = vadd.f32 %v182_v47, %v181_v43 }
  0xec   :  { %v152_v34 = vpop.xlane.xlu0 %151 }
  0xed   :  { %v153_v35 = vrot.slane %v152_v34, 4 }
  0xef   :  { %v154_v36 = vadd.f32 %v153_v35, %v152_v34 }
  0xf0   :  { %v165_v38 = vpop.xlane.xlu0 %164 }
  0xf1   :  { %v155_v39 = vrot.slane %v154_v36, 2  ;;  %v166_v40 = vrot.slane %v165_v38, 4 }
  0xf3   :  { %v167_v41 = vadd.f32 %v166_v40, %v165_v38  ;;  %v156_v42 = vadd.f32 %v155_v39, %v154_v36 }
  0xf5   :  { %v168_v44 = vrot.slane %v167_v41, 2  ;;  %v157_v11 = vrot.slane %v156_v42, 1 }
  0xf7   :  { %v169_v45 = vadd.f32 %v168_v44, %v167_v41  ;;  %v158_v46 = vadd.f32 %v157_v11, %v156_v42 }
  0xf9   :  { %201 = vpush %v158_v46  ;;  %v170_v12 = vrot.slane %v169_v45, 1 }
  0xfb   :  { %v171_v48 = vadd.f32 %v170_v12, %v169_v45 }
  0xfd   :  { %203 = vpush %v171_v48 }
  0xfe   :  { %205 = vpush %v183_v49 }
 0x12a   :  { %s202_s3 = spop %201 }
 0x12b   :  { %v188_v54 = vstv %s202_s3 }
 0x12e   :  { %s204_s6 = spop %203 }
 0x12f   :  { %v185_v52 = vstv %s204_s6  ;;  %s206_s7 = spop %205 }
 0x130   :  { %v186_v53 = vstv %s206_s7 }
 0x131   :  { %v187_v55 = vsel %vm160_vm0, %v185_v52, %v186_v53 }
 0x132   :  { %v189_v56 = vsel %vm143_vm1, %v188_v54, %v187_v55 }
 0x133   :  { %190 = vst [vmem:[%s455_s4] sm:$0xff] %v189_v56 }
 0x134   :  { %199 = vsyncpa [#allocation3], 1 }
 0x135   :  { %200 = vsyncpa [#allocation5], 1 }

</bundles_post_ra>
